<compile_context>
chip_gen: v7x
topology: tpu7x:2x2x1
jax: 0.10.0
libtpu: 0.0.40
codegen_flags: <defaults>
</compile_context>

<pallas_src>
import functools

import jax
import jax.numpy as jnp
from jax.experimental import pallas as pl
from jax.experimental.pallas import tpu as pltpu

HIDDEN = 768          # RoBERTa-base hidden size (linear1 expects 768 inputs)
NUM_CLASSES = 30
NPAD = 128            # lane-dense padded class dim (multiple of 128)
VOCAB = 100
VPAD = 128            # vocab padded to a lane-dense one-hot width
SEQ = 8
BATCH = 2
LN_EPS = 1e-5


# ---------------------------------------------------------------------------
# Fused kernel: one-hot MXU embedding gather + LayerNorm + seq pool + head
# ---------------------------------------------------------------------------
def _fused_kernel(bt, s, h_dim,
                  ids_ref,       # (BT*S, 1)   int32  token ids for this batch tile
                  we_ref,        # (VPAD, H)   bf16   word embeddings (vocab zero-padded)
                  pe_ref,        # (S, H)      f32    position embeddings
                  gamma_ref,     # (1, H)      f32    LN gamma
                  beta_ref,      # (1, H)      f32    LN beta
                  w_ref,         # (H, NPAD)   bf16   head weight (1/S folded, class-padded)
                  b_ref,         # (1, NPAD)   f32    head bias (class-padded)
                  o_ref):        # (BT, NPAD)  f32    output logits (padded lanes)
    rows = bt * s

    # --- one-hot MXU gather:  h[r] = word_emb[ids[r]] ------------------------
    # onehot[r, v] = (ids[r] == v); token ids >= VOCAB hit zero-padded table
    # rows, so there is no out-of-bounds VMEM read.  VPAD=128 keeps the one-hot
    # lane-dense; the dot runs on the otherwise-idle MXU, no scratch needed.
    ids = ids_ref[...]                                              # (rows, 1)
    vocab_iota = jax.lax.broadcasted_iota(jnp.int32, (rows, VPAD), 1)
    onehot = (vocab_iota == ids).astype(we_ref.dtype)               # (rows, VPAD) bf16
    h = jnp.dot(onehot, we_ref[...],
                preferred_element_type=jnp.float32)                 # (rows, H) f32
    h = h.reshape(bt, s, h_dim) + pe_ref[...]                       # (BT, S, H)

    # --- LayerNorm over hidden dim, single-pass stats (f32 on VPU/EUP) -------
    inv_h = 1.0 / h_dim
    mu = jnp.sum(h, axis=-1, keepdims=True) * inv_h
    ex2 = jnp.sum(h * h, axis=-1, keepdims=True) * inv_h
    var = ex2 - mu * mu
    hn = (h - mu) * jax.lax.rsqrt(var + LN_EPS) * gamma_ref[...] + beta_ref[...]

    # --- pool BEFORE the head matmul (mean's 1/S folded into W) --------------
    pooled = jnp.sum(hn, axis=1)                                    # (BT, H) f32

    # --- head matmul: bf16 operands, f32 accumulation, lane-dense output -----
    logits = jnp.dot(pooled.astype(w_ref.dtype), w_ref[...],
                     preferred_element_type=jnp.float32)            # (BT, NPAD)
    o_ref[...] = logits + b_ref[...]


def model_forward(token_ids, params):
    """Forward pass of Model: roberta(x) -> mean over seq -> Linear(768, 30)."""
    B, S = token_ids.shape

    # Batch tile: at real batch sizes use a multiple of 8 (full-sublane output
    # stores) with grid >= 2 so the "parallel" axis shards across v7x's two
    # TensorCores and the pipeline overlaps DMA with compute.  At the toy B=2
    # a single full-batch step is optimal (block == full array dims).
    if B >= 16 and B % 8 == 0:
        BT = 8
    else:
        BT = B
    grid_b = B // BT

    kernel = functools.partial(_fused_kernel, BT, S, HIDDEN)

    out_padded = pl.pallas_call(
        kernel,
        out_shape=jax.ShapeDtypeStruct((B, NPAD), jnp.float32),
        grid=(grid_b,),
        in_specs=[
            pl.BlockSpec((BT * S, 1), lambda i: (i, 0)),            # token ids
            pl.BlockSpec((VPAD, HIDDEN), lambda i: (0, 0)),         # word_emb (bf16)
            pl.BlockSpec((S, HIDDEN), lambda i: (0, 0)),            # pos_emb
            pl.BlockSpec((1, HIDDEN), lambda i: (0, 0)),            # ln_gamma
            pl.BlockSpec((1, HIDDEN), lambda i: (0, 0)),            # ln_beta
            pl.BlockSpec((HIDDEN, NPAD), lambda i: (0, 0)),         # W (padded, bf16)
            pl.BlockSpec((1, NPAD), lambda i: (0, 0)),              # b (padded)
        ],
        out_specs=pl.BlockSpec((BT, NPAD), lambda i: (i, 0)),
        compiler_params=pltpu.CompilerParams(
            dimension_semantics=("parallel",),        # batch tiles independent
            vmem_limit_bytes=32 * 1024 * 1024),       # well above need, < v7x 64 MiB
    )(
        token_ids.reshape(-1, 1).astype(jnp.int32),
        params["word_emb_padded"],
        params["pos_emb"],
        params["ln_gamma"].reshape(1, HIDDEN),
        params["ln_beta"].reshape(1, HIDDEN),
        params["w1_padded"],
        params["b1_padded"],
    )
    return out_padded[:, :NUM_CLASSES]                # drop zero-padded lanes


# ---------------------------------------------------------------------------
# Deterministic stand-in for the injected `roberta` submodule (reference only).
# ---------------------------------------------------------------------------
def roberta_stub(token_ids, word_emb, pos_emb, ln_gamma, ln_beta):
    h = word_emb[token_ids] + pos_emb[None, : token_ids.shape[1], :]   # (B, S, H)
    mu = jnp.mean(h, axis=-1, keepdims=True)
    var = jnp.mean((h - mu) ** 2, axis=-1, keepdims=True)
    return ((h - mu) * jax.lax.rsqrt(var + LN_EPS)) * ln_gamma + ln_beta


def init_params(key, seq_len=SEQ):
    k0, k1, k2, k3 = jax.random.split(key, 4)
    bound = 1.0 / jnp.sqrt(HIDDEN)                    # nn.Linear default init
    w1 = jax.random.uniform(k2, (HIDDEN, NUM_CLASSES), jnp.float32, -bound, bound)
    b1 = jax.random.uniform(k3, (NUM_CLASSES,), jnp.float32, -bound, bound)
    word_emb = jax.random.normal(k0, (VOCAB, HIDDEN), jnp.float32) * 0.02
    # Kernel-side params prepared once at init:
    #   * word embeddings zero-padded along vocab (100 -> 128) and cast to bf16
    #     for the one-hot MXU gather (OOB ids gather to exact zero),
    #   * 1/S (mean) folded into the head weight, class dim zero-padded 30->128,
    #     weight cast to bf16 (f32 accumulation inside the kernel).
    word_emb_padded = (jnp.zeros((VPAD, HIDDEN), jnp.float32)
                       .at[:VOCAB, :].set(word_emb)).astype(jnp.bfloat16)
    w1_padded = (jnp.zeros((HIDDEN, NPAD), jnp.float32)
                 .at[:, :NUM_CLASSES].set(w1 / seq_len)).astype(jnp.bfloat16)
    b1_padded = jnp.zeros((1, NPAD), jnp.float32).at[:, :NUM_CLASSES].set(b1)
    return {
        "word_emb": word_emb,
        "word_emb_padded": word_emb_padded,
        "pos_emb": jax.random.normal(k1, (SEQ, HIDDEN), jnp.float32) * 0.02,
        "ln_gamma": jnp.ones((HIDDEN,), jnp.float32),
        "ln_beta": jnp.zeros((HIDDEN,), jnp.float32),
        "w1": w1, "b1": b1,
        "w1_padded": w1_padded, "b1_padded": b1_padded,
    }


if __name__ == "__main__":
    params = init_params(jax.random.PRNGKey(0))
    token_ids = jax.random.randint(jax.random.PRNGKey(1), (BATCH, SEQ), 0, VOCAB,
                                   dtype=jnp.int32)

    fwd = jax.jit(model_forward)
    out = jax.block_until_ready(fwd(token_ids, params))
    assert out.shape == (BATCH, NUM_CLASSES), out.shape

    # Pure-JAX f32 reference for the module semantics (mean over seq + linear).
    hidden_ref = roberta_stub(token_ids, params["word_emb"], params["pos_emb"],
                              params["ln_gamma"], params["ln_beta"])
    ref = jnp.mean(hidden_ref, axis=1) @ params["w1"] + params["b1"]
    # Tolerance covers the bf16 embedding table + bf16 head operands (f32 acc).
    assert jnp.allclose(out, ref, atol=2e-2, rtol=2e-2), float(
        jnp.max(jnp.abs(out - ref)))

    print("KERNEL_OK")
</pallas_src>

<mosaic_0001>
module attributes {stable_mosaic.version = 11 : i64} {
  func.func @_fused_kernel(%arg0: i32, %arg1: memref<16x1xi32, #tpu.memory_space<vmem>>, %arg2: memref<128x768xbf16, #tpu.memory_space<vmem>>, %arg3: memref<8x768xf32, #tpu.memory_space<vmem>>, %arg4: memref<1x768xf32, #tpu.memory_space<vmem>>, %arg5: memref<1x768xf32, #tpu.memory_space<vmem>>, %arg6: memref<768x128xbf16, #tpu.memory_space<vmem>>, %arg7: memref<1x128xf32, #tpu.memory_space<vmem>>, %arg8: memref<2x128xf32, #tpu.memory_space<vmem>>) attributes {dimension_semantics = [#tpu.dimension_semantics<parallel>], iteration_bounds = array<i64: 1>, scalar_prefetch = 0 : i64, scratch_operands = 0 : i64, tpu.core_type = #tpu.core_type<tc>, window_params = [{transform_indices = @transform_0, window_bounds = array<i64: 16, 1>}, {pipeline_mode = #tpu.pipeline_mode<synchronous>, transform_indices = @transform_1, window_bounds = array<i64: 128, 768>}, {pipeline_mode = #tpu.pipeline_mode<synchronous>, transform_indices = @transform_2, window_bounds = array<i64: 8, 768>}, {pipeline_mode = #tpu.pipeline_mode<synchronous>, transform_indices = @transform_3, window_bounds = array<i64: 1, 768>}, {pipeline_mode = #tpu.pipeline_mode<synchronous>, transform_indices = @transform_4, window_bounds = array<i64: 1, 768>}, {pipeline_mode = #tpu.pipeline_mode<synchronous>, transform_indices = @transform_5, window_bounds = array<i64: 768, 128>}, {pipeline_mode = #tpu.pipeline_mode<synchronous>, transform_indices = @transform_6, window_bounds = array<i64: 1, 128>}, {transform_indices = @transform_7, window_bounds = array<i64: 2, 128>}]} {
    %c0 = arith.constant 0 : index
    %c0_0 = arith.constant 0 : index
    %0 = vector.load %arg1[%c0, %c0_0] : memref<16x1xi32, #tpu.memory_space<vmem>>, vector<16x1xi32>
    %1 = tpu.iota {dimensions = array<i32: 1>} : vector<16x128xi32>
    %2 = vector.broadcast %0 : vector<16x1xi32> to vector<16x128xi32>
    %3 = arith.cmpi eq, %1, %2 : vector<16x128xi32>
    %4 = arith.extui %3 : vector<16x128xi1> to vector<16x128xi32>
    %5 = arith.sitofp %4 : vector<16x128xi32> to vector<16x128xf32>
    %6 = arith.truncf %5 : vector<16x128xf32> to vector<16x128xbf16>
    %c0_1 = arith.constant 0 : index
    %c0_2 = arith.constant 0 : index
    %7 = vector.load %arg2[%c0_1, %c0_2] : memref<128x768xbf16, #tpu.memory_space<vmem>>, vector<128x768xbf16>
    %cst = arith.constant dense<0.000000e+00> : vector<16x768xf32>
    %8 = tpu.matmul %6, %7, %cst {dimension_numbers = #tpu.dot_dimension_numbers<[1], [0], [0], [1], [0, 0, 1, 1], [], []>} : vector<16x128xbf16>, vector<128x768xbf16>, vector<16x768xf32> -> vector<16x768xf32>
    %9 = vector.shape_cast %8 : vector<16x768xf32> to vector<2x8x768xf32>
    %c0_3 = arith.constant 0 : index
    %c0_4 = arith.constant 0 : index
    %10 = vector.load %arg3[%c0_3, %c0_4] : memref<8x768xf32, #tpu.memory_space<vmem>>, vector<8x768xf32>
    %11 = vector.shape_cast %10 : vector<8x768xf32> to vector<1x8x768xf32>
    %12 = vector.broadcast %11 : vector<1x8x768xf32> to vector<2x8x768xf32>
    %13 = arith.addf %9, %12 : vector<2x8x768xf32>
    %cst_5 = arith.constant dense<0.000000e+00> : vector<2x8xf32>
    %14 = vector.multi_reduction <add>, %13, %cst_5 [2] : vector<2x8x768xf32> to vector<2x8xf32>
    %15 = vector.shape_cast %14 : vector<2x8xf32> to vector<2x8x1xf32>
    %cst_6 = arith.constant 0.00130208337 : f32
    %16 = vector.broadcast %cst_6 : f32 to vector<2x8x1xf32>
    %17 = arith.mulf %15, %16 : vector<2x8x1xf32>
    %18 = arith.mulf %13, %13 : vector<2x8x768xf32>
    %cst_7 = arith.constant dense<0.000000e+00> : vector<2x8xf32>
    %19 = vector.multi_reduction <add>, %18, %cst_7 [2] : vector<2x8x768xf32> to vector<2x8xf32>
    %20 = vector.shape_cast %19 : vector<2x8xf32> to vector<2x8x1xf32>
    %cst_8 = arith.constant 0.00130208337 : f32
    %21 = vector.broadcast %cst_8 : f32 to vector<2x8x1xf32>
    %22 = arith.mulf %20, %21 : vector<2x8x1xf32>
    %23 = arith.mulf %17, %17 : vector<2x8x1xf32>
    %24 = arith.subf %22, %23 : vector<2x8x1xf32>
    %25 = vector.broadcast %17 : vector<2x8x1xf32> to vector<2x8x768xf32>
    %26 = arith.subf %13, %25 : vector<2x8x768xf32>
    %cst_9 = arith.constant 9.99999974E-6 : f32
    %27 = vector.broadcast %cst_9 : f32 to vector<2x8x1xf32>
    %28 = arith.addf %24, %27 : vector<2x8x1xf32>
    %29 = math.rsqrt %28 : vector<2x8x1xf32>
    %30 = vector.broadcast %29 : vector<2x8x1xf32> to vector<2x8x768xf32>
    %31 = arith.mulf %26, %30 : vector<2x8x768xf32>
    %c0_10 = arith.constant 0 : index
    %c0_11 = arith.constant 0 : index
    %32 = vector.load %arg4[%c0_10, %c0_11] : memref<1x768xf32, #tpu.memory_space<vmem>>, vector<1x768xf32>
    %33 = vector.shape_cast %32 : vector<1x768xf32> to vector<1x1x768xf32>
    %34 = vector.broadcast %33 : vector<1x1x768xf32> to vector<2x8x768xf32>
    %35 = arith.mulf %31, %34 : vector<2x8x768xf32>
    %c0_12 = arith.constant 0 : index
    %c0_13 = arith.constant 0 : index
    %36 = vector.load %arg5[%c0_12, %c0_13] : memref<1x768xf32, #tpu.memory_space<vmem>>, vector<1x768xf32>
    %37 = vector.shape_cast %36 : vector<1x768xf32> to vector<1x1x768xf32>
    %38 = vector.broadcast %37 : vector<1x1x768xf32> to vector<2x8x768xf32>
    %39 = arith.addf %35, %38 : vector<2x8x768xf32>
    %cst_14 = arith.constant dense<0.000000e+00> : vector<2x768xf32>
    %40 = vector.multi_reduction <add>, %39, %cst_14 [1] : vector<2x8x768xf32> to vector<2x768xf32>
    %41 = arith.truncf %40 : vector<2x768xf32> to vector<2x768xbf16>
    %c0_15 = arith.constant 0 : index
    %c0_16 = arith.constant 0 : index
    %42 = vector.load %arg6[%c0_15, %c0_16] : memref<768x128xbf16, #tpu.memory_space<vmem>>, vector<768x128xbf16>
    %cst_17 = arith.constant dense<0.000000e+00> : vector<2x128xf32>
    %43 = tpu.matmul %41, %42, %cst_17 {dimension_numbers = #tpu.dot_dimension_numbers<[1], [0], [0], [1], [0, 0, 1, 1], [], []>} : vector<2x768xbf16>, vector<768x128xbf16>, vector<2x128xf32> -> vector<2x128xf32>
    %c0_18 = arith.constant 0 : index
    %c0_19 = arith.constant 0 : index
    %44 = vector.load %arg7[%c0_18, %c0_19] : memref<1x128xf32, #tpu.memory_space<vmem>>, vector<1x128xf32>
    %45 = vector.broadcast %44 : vector<1x128xf32> to vector<2x128xf32>
    %46 = arith.addf %43, %45 : vector<2x128xf32>
    %c0_20 = arith.constant 0 : index
    %c0_21 = arith.constant 0 : index
    %47 = vector.load %arg8[%c0_20, %c0_21] : memref<2x128xf32, #tpu.memory_space<vmem>>, vector<2x128xf32>
    tpu.vector_store %arg8[%c0_20, %c0_21], %46 {strides = array<i32>} : memref<2x128xf32, #tpu.memory_space<vmem>>, vector<2x128xf32>,
    return
  }
  func.func @transform_0(%arg0: i32) -> (i32, i32) {
    %c0_i32 = arith.constant 0 : i32
    %c0_i32_0 = arith.constant 0 : i32
    return %arg0, %c0_i32 : i32, i32
  }
  func.func @transform_1(%arg0: i32) -> (i32, i32) {
    %c0_i32 = arith.constant 0 : i32
    %c0_i32_0 = arith.constant 0 : i32
    %c0_i32_1 = arith.constant 0 : i32
    return %c0_i32, %c0_i32_0 : i32, i32
  }
  func.func @transform_2(%arg0: i32) -> (i32, i32) {
    %c0_i32 = arith.constant 0 : i32
    %c0_i32_0 = arith.constant 0 : i32
    %c0_i32_1 = arith.constant 0 : i32
    return %c0_i32, %c0_i32_0 : i32, i32
  }
  func.func @transform_3(%arg0: i32) -> (i32, i32) {
    %c0_i32 = arith.constant 0 : i32
    %c0_i32_0 = arith.constant 0 : i32
    %c0_i32_1 = arith.constant 0 : i32
    return %c0_i32, %c0_i32_0 : i32, i32
  }
  func.func @transform_4(%arg0: i32) -> (i32, i32) {
    %c0_i32 = arith.constant 0 : i32
    %c0_i32_0 = arith.constant 0 : i32
    %c0_i32_1 = arith.constant 0 : i32
    return %c0_i32, %c0_i32_0 : i32, i32
  }
  func.func @transform_5(%arg0: i32) -> (i32, i32) {
    %c0_i32 = arith.constant 0 : i32
    %c0_i32_0 = arith.constant 0 : i32
    %c0_i32_1 = arith.constant 0 : i32
    return %c0_i32, %c0_i32_0 : i32, i32
  }
  func.func @transform_6(%arg0: i32) -> (i32, i32) {
    %c0_i32 = arith.constant 0 : i32
    %c0_i32_0 = arith.constant 0 : i32
    %c0_i32_1 = arith.constant 0 : i32
    return %c0_i32, %c0_i32_0 : i32, i32
  }
  func.func @transform_7(%arg0: i32) -> (i32, i32) {
    %c0_i32 = arith.constant 0 : i32
    %c0_i32_0 = arith.constant 0 : i32
    return %arg0, %c0_i32 : i32, i32
  }
}

</mosaic_0001>

<bundles_post_ra>
// kernel: model_forward.1
= control target key start
LH: loop header
LB: loop body
LE: loop exit
PB: predicated region body
PF: predicated region fallthrough
CT: control target
= control target key end

     0   :  { %12 = vsyncpa [#allocation3], 0  ;;  %s1959_s0 = inlined_call_operand.vmem [shape: s32[16,1], index: 0, kind: input, shape index: {}]   ;;  %s1960_s1 = inlined_call_operand.hbm [shape: bf16[128,768], index: 1, kind: input, shape index: {}]   ;;  %s1961_s2 = inlined_call_operand.vmem [shape: f32[8,768], index: 2, kind: input, shape index: {}]   ;;  %s1962_s3 = inlined_call_operand.vmem [shape: f32[1,768], index: 3, kind: input, shape index: {}]   ;;  %s1963_s4 = inlined_call_operand.vmem [shape: f32[1,768], index: 4, kind: input, shape index: {}]   ;;  %s1964_s5 = inlined_call_operand.hbm [shape: bf16[768,128], index: 5, kind: input, shape index: {}]   ;;  %s1965_s6 = inlined_call_operand.vmem [shape: f32[1,128], index: 6, kind: input, shape index: {}]   ;;  %s1966_s7 = inlined_call_operand.hbm [shape: f32[2,128], index: 7, kind: output, shape index: {}]  }
   0x1   :  { %13 = vsyncpa [#allocation6], 0 }
   0x2   :  { %14 = vsyncpa [#allocation4], 0  ;;  %s1704_s24 = smov [#allocation2]   ;;  %s1632_s28 = scalar_lea.hbm %s1960_s1, 6144 }
   0x3   :  { %s22_s25 = sshll.u32 %s1704_s24, 4  ;;  %p1633_p0 = scmp.ne.s32.totalorder %s1960_s1, %s1632_s28  ;;  %s23_s25 = int_to_ptr.vmem [resolvable:$true] %s22_s25 }
   0x4   :  { %p1636_p1 = scmp.lt.u32.totalorder %s1632_s28, %s1960_s1 }
   0x6   :  { %p1638_p2 = pnand %p1636_p1, %p1633_p0 }
   0x8   :  { %1641 = shalt.err (!%p1638_p2)
}
   0x9   :  { %s1642_s10 = scalar_lea.vmem %s23_s25, 6144  ;;  %p1647_p4 = scmp.lt.s32.totalorder %s23_s25, %s23_s25 }
   0xa   :  { %p1643_p3 = scmp.ne.s32.totalorder %s23_s25, %s1642_s10  ;;  %p1648_p5 = scmp.lt.s32.totalorder %s1642_s10, %s1642_s10 }
   0xc   :  { %p1649_p6 = por %p1648_p5, %p1647_p4 }
   0xe   :  { %p1650_p7 = pnand %p1649_p6, %p1643_p3 }
  0x10   :  { %1653 = shalt.err (!%p1650_p7)
}
  0x11   :  { %s1705_s11 = smov 384   ;;  %s1706_s12 = smov 24  }
  0x12   :  { %28 = dma.hbm_to_vmem [thread:$0]  %s1960_s1, 6144, %s23_s25, [#allocation3], %s1705_s11, %s1705_s11, %s1706_s12  }
  0x13   :  { %s1707_s15 = smov [#allocation5]   ;;  %s1654_s19 = scalar_lea.hbm %s1964_s5, 6144 }
  0x14   :  { %s40_s16 = sshll.u32 %s1707_s15, 4  ;;  %p1655_p8 = scmp.ne.s32.totalorder %s1964_s5, %s1654_s19  ;;  %s41_s16 = int_to_ptr.vmem [resolvable:$true] %s40_s16 }
  0x15   :  { %p1658_p9 = scmp.lt.u32.totalorder %s1654_s19, %s1964_s5 }
  0x17   :  { %p1660_p10 = pnand %p1658_p9, %p1655_p8 }
  0x19   :  { %1663 = shalt.err (!%p1660_p10)
}
  0x1a   :  { %s1664_s24 = scalar_lea.vmem %s41_s16, 6144  ;;  %p1669_p12 = scmp.lt.s32.totalorder %s41_s16, %s41_s16 }
  0x1b   :  { %p1665_p11 = scmp.ne.s32.totalorder %s41_s16, %s1664_s24  ;;  %p1670_p13 = scmp.lt.s32.totalorder %s1664_s24, %s1664_s24 }
  0x1d   :  { %p1671_p0 = por %p1670_p13, %p1669_p12 }
  0x1f   :  { %p1672_p1 = pnand %p1671_p0, %p1665_p11 }
  0x21   :  { %1675 = shalt.err (!%p1672_p1)
}
  0x22   :  { %s1708_s1 = smov 64   ;;  %s1709_s25 = smov 4  }
  0x23   :  { %46 = dma.hbm_to_vmem [thread:$0]  %s1964_s5, 6144, %s41_s16, [#allocation6], %s1708_s1, %s1708_s1, %s1709_s25  }
  0x24   :  { %1698 = dma.done.wait [#allocation3], 6144  }
  0x25   :  { %1699 = vsyncadd [#allocation3], 4294961152 }
  0x26   :  { %1700 = dma.done.wait [#allocation6], 6144  }
  0x27   :  { %1701 = vsyncadd [#allocation6], 4294961152  ;;  %v1710_v0 = vmov 0   ;;  %v56_v1 = vld [vmem:[%s1959_s0] sm:$0xff]  ;;  %v57_v2 = vld [vmem:[%s1959_s0 + $0x8] sm:$0xff]  ;;  %v58_v36 = vlaneseq  ;;  %vm883_vm3 = vcmask 1041409  }
  0x28   :  { %1507 = vset.pattern.permute.xlu0 %v1710_v0  ;;  %393 = vmatprep.mubr.bf16.mxu0 %v1710_v0  ;;  %v1508_v3 = vld [vmem:[#allocation2 + $0x4] ss:$24 sps:$4 sm:$0xff]   ;;  %v1510_v4 = vld [vmem:[#allocation2] ss:$24 sps:$4 sm:$0xff]   ;;  %v1514_v7 = vld [vmem:[#allocation2 + $0x34] ss:$24 sps:$4 sm:$0xff]  }
  0x29   :  { %436 = vmatprep.mubr.bf16.mxu1 %v1710_v0  ;;  %61 = vperm.xlu0 %1507, %v56_v1   ;;  %v1511_v5 = vld [vmem:[#allocation2 + $0xc] ss:$24 sps:$4 sm:$0xff]   ;;  %v1513_v6 = vld [vmem:[#allocation2 + $0x8] ss:$24 sps:$4 sm:$0xff]   ;;  %v1517_v9 = vld [vmem:[#allocation2 + $0x3c] ss:$24 sps:$4 sm:$0xff]  }
  0x2a   :  { %361 = vmatprep.subr.bf16.mxu0 %v1508_v3  ;;  %404 = vmatprep.subr.bf16.mxu1 %v1511_v5  ;;  %v1516_v8 = vld [vmem:[#allocation2 + $0x30] ss:$24 sps:$4 sm:$0xff]   ;;  %v1520_v11 = vld [vmem:[#allocation2 + $0x64] ss:$24 sps:$4 sm:$0xff]   ;;  %v1522_v12 = vld [vmem:[#allocation2 + $0x60] ss:$24 sps:$4 sm:$0xff]  }
  0x2b   :  { %362 = vmatpush1.bf16.msra.mxu0 %v1510_v4  ;;  %405 = vmatpush1.bf16.msra.mxu1 %v1513_v6  ;;  %v1519_v10 = vld [vmem:[#allocation2 + $0x38] ss:$24 sps:$4 sm:$0xff]   ;;  %v1523_v13 = vld [vmem:[#allocation2 + $0x6c] ss:$24 sps:$4 sm:$0xff]   ;;  %v1525_v14 = vld [vmem:[#allocation2 + $0x68] ss:$24 sps:$4 sm:$0xff]  }
  0x2c   :  { %363 = vmatprep.subr.bf16.mxu0 %v1514_v7  ;;  %406 = vmatprep.subr.bf16.mxu1 %v1517_v9  ;;  %v1526_v15 = vld [vmem:[#allocation2 + $0x94] ss:$24 sps:$4 sm:$0xff]   ;;  %v1528_v17 = vld [vmem:[#allocation2 + $0x90] ss:$24 sps:$4 sm:$0xff]   ;;  %v1532_v19 = vld [vmem:[#allocation2 + $0xc4] ss:$24 sps:$4 sm:$0xff]  }
  0x2d   :  { %64 = vperm.xlu0 %1507, %v57_v2   ;;  %v1529_v16 = vld [vmem:[#allocation2 + $0x9c] ss:$24 sps:$4 sm:$0xff]   ;;  %v1531_v18 = vld [vmem:[#allocation2 + $0x98] ss:$24 sps:$4 sm:$0xff]   ;;  %v1535_v20 = vld [vmem:[#allocation2 + $0xcc] ss:$24 sps:$4 sm:$0xff]  }
  0x2e   :  { %v1534_v21 = vld [vmem:[#allocation2 + $0xc0] ss:$24 sps:$4 sm:$0xff]   ;;  %v1538_v23 = vld [vmem:[#allocation2 + $0xf4] ss:$24 sps:$4 sm:$0xff]   ;;  %v1540_v25 = vld [vmem:[#allocation2 + $0xf0] ss:$24 sps:$4 sm:$0xff]  }
  0x2f   :  { %364 = vmatpush1.bf16.msra.mxu0 %v1516_v8  ;;  %407 = vmatpush1.bf16.msra.mxu1 %v1519_v10  ;;  %v1537_v22 = vld [vmem:[#allocation2 + $0xc8] ss:$24 sps:$4 sm:$0xff]   ;;  %v1541_v24 = vld [vmem:[#allocation2 + $0xfc] ss:$24 sps:$4 sm:$0xff]   ;;  %v1543_v26 = vld [vmem:[#allocation2 + $0xf8] ss:$24 sps:$4 sm:$0xff]  }
  0x30   :  { %365 = vmatprep.subr.bf16.mxu0 %v1520_v11  ;;  %408 = vmatprep.subr.bf16.mxu1 %v1523_v13  ;;  %v1544_v27 = vld [vmem:[#allocation2 + $0x124] ss:$24 sps:$4 sm:$0xff]   ;;  %v1546_v29 = vld [vmem:[#allocation2 + $0x120] ss:$24 sps:$4 sm:$0xff]   ;;  %v1550_v31 = vld [vmem:[#allocation2 + $0x154] ss:$24 sps:$4 sm:$0xff]  }
  0x31   :  { %v1547_v28 = vld [vmem:[#allocation2 + $0x12c] ss:$24 sps:$4 sm:$0xff]   ;;  %v1549_v30 = vld [vmem:[#allocation2 + $0x128] ss:$24 sps:$4 sm:$0xff]   ;;  %v1553_v32 = vld [vmem:[#allocation2 + $0x15c] ss:$24 sps:$4 sm:$0xff]  }
  0x32   :  { %v1552_v33 = vld [vmem:[#allocation2 + $0x150] ss:$24 sps:$4 sm:$0xff]   ;;  %v1558_v35 = vld [vmem:[#allocation2 + $0x14] ss:$24 sps:$4 sm:$0xff]   ;;  %v59_v38 = vand.u32 127, %v58_v36  ;;  %v490_v1 = vld [vmem:[%s1961_s2] sm:$0xff] }
  0x33   :  { %366 = vmatpush1.bf16.msra.mxu0 %v1522_v12  ;;  %409 = vmatpush1.bf16.msra.mxu1 %v1525_v14  ;;  %v1555_v34 = vld [vmem:[#allocation2 + $0x158] ss:$24 sps:$4 sm:$0xff]   ;;  %v1561_v41 = vld [vmem:[#allocation2 + $0x44] ss:$24 sps:$4 sm:$0xff]   ;;  %v1711_v43 = vmov 1.0|1.0  }
  0x34   :  { %367 = vmatprep.subr.bf16.mxu0 %v1526_v15  ;;  %410 = vmatprep.subr.bf16.mxu1 %v1529_v16  ;;  %v1556_v40 = vld [vmem:[#allocation2 + $0x10] ss:$24 sps:$4 sm:$0xff]   ;;  %v1559_v44 = vld [vmem:[#allocation2 + $0x40] ss:$24 sps:$4 sm:$0xff]   ;;  %v1564_v45 = vld [vmem:[#allocation2 + $0x74] ss:$24 sps:$4 sm:$0xff]  }
  0x35   :  { %v1562_v46 = vld [vmem:[#allocation2 + $0x70] ss:$24 sps:$4 sm:$0xff]   ;;  %v1567_v47 = vld [vmem:[#allocation2 + $0xa4] ss:$24 sps:$4 sm:$0xff]   ;;  %v1565_v48 = vld [vmem:[#allocation2 + $0xa0] ss:$24 sps:$4 sm:$0xff]  }
  0x36   :  { %v1570_v49 = vld [vmem:[#allocation2 + $0xd4] ss:$24 sps:$4 sm:$0xff]   ;;  %v1568_v50 = vld [vmem:[#allocation2 + $0xd0] ss:$24 sps:$4 sm:$0xff]   ;;  %v1573_v51 = vld [vmem:[#allocation2 + $0x104] ss:$24 sps:$4 sm:$0xff]  }
  0x37   :  { %368 = vmatpush1.bf16.msra.mxu0 %v1528_v17  ;;  %411 = vmatpush1.bf16.msra.mxu1 %v1531_v18  ;;  %v1571_v52 = vld [vmem:[#allocation2 + $0x100] ss:$24 sps:$4 sm:$0xff]   ;;  %v1576_v53 = vld [vmem:[#allocation2 + $0x134] ss:$24 sps:$4 sm:$0xff]   ;;  %v1574_v54 = vld [vmem:[#allocation2 + $0x130] ss:$24 sps:$4 sm:$0xff]  }
  0x38   :  { %369 = vmatprep.subr.bf16.mxu0 %v1532_v19  ;;  %412 = vmatprep.subr.bf16.mxu1 %v1535_v20  ;;  %v1579_v55 = vld [vmem:[#allocation2 + $0x164] ss:$24 sps:$4 sm:$0xff]   ;;  %v1577_v56 = vld [vmem:[#allocation2 + $0x160] ss:$24 sps:$4 sm:$0xff]   ;;  %v491_v2 = vld [vmem:[%s1961_s2 + $0x8] sm:$0xff]  ;;  %s1712_s22 = smov [#allocation7]  }
  0x39   :  { %v492_v5 = vld [vmem:[%s1961_s2 + $0x10] sm:$0xff]  ;;  %v493_v12 = vld [vmem:[%s1961_s2 + $0x18] sm:$0xff]  ;;  %s1317_s23 = sshll.u32 %s1712_s22, 4  ;;  %s1318_s23 = int_to_ptr.vmem [resolvable:$true] %s1317_s23 }
  0x3a   :  { %p1681_p3 = scmp.lt.s32.totalorder %s1318_s23, %s1318_s23 }
  0x3b   :  { %370 = vmatpush1.bf16.msra.mxu0 %v1534_v21  ;;  %413 = vmatpush1.bf16.msra.mxu1 %v1537_v22  ;;  %v494_v22 = vld [vmem:[%s1961_s2 + $0x20] sm:$0xff] }
  0x3c   :  { %371 = vmatprep.subr.bf16.mxu0 %v1538_v23  ;;  %414 = vmatprep.subr.bf16.mxu1 %v1541_v24 }
  0x3f   :  { %372 = vmatpush1.bf16.msra.mxu0 %v1540_v25  ;;  %415 = vmatpush1.bf16.msra.mxu1 %v1543_v26  ;;  %v495_v25 = vld [vmem:[%s1961_s2 + $0x28] sm:$0xff] }
  0x40   :  { %373 = vmatprep.subr.bf16.mxu0 %v1544_v27  ;;  %416 = vmatprep.subr.bf16.mxu1 %v1547_v28 }
  0x43   :  { %374 = vmatpush1.bf16.msra.mxu0 %v1546_v29  ;;  %417 = vmatpush1.bf16.msra.mxu1 %v1549_v30 }
  0x44   :  { %375 = vmatprep.subr.bf16.mxu0 %v1550_v31  ;;  %418 = vmatprep.subr.bf16.mxu1 %v1553_v32 }
  0x47   :  { %376 = vmatpush1.bf16.msra.mxu0 %v1552_v33  ;;  %419 = vmatpush1.bf16.msra.mxu1 %v1555_v34 }
  0x48   :  { %447 = vmatprep.subr.bf16.mxu0 %v1558_v35 }
  0xa8   :  { %v62_v37 = vpop.permute.xlu0 %61 }
  0xa9   :  { %vm66_vm0 = vcmp.eq.s32.totalorder %v59_v38, %v62_v37 }
  0xac   :  { %v65_v39 = vpop.permute.xlu0 %64 }
  0xad   :  { %vm67_vm1 = vcmp.eq.s32.totalorder %v59_v38, %v65_v39 }
  0xae   :  { %vm1787_vm2 = vmpackc.low %vm67_vm1, %vm66_vm0 }
  0xaf   :  { %1378 = vmatmul.mubr.msk.bf16.vlgmr.msra.gmra.mrb[0].mxu0 %vm1787_vm2, %v1711_v43  ;;  %1380 = vmatmul.mubr.msk.bf16.vlgmr.msra.gmra.mrb[0].mxu1 %vm1787_vm2, %v1711_v43 }
  0xb0   :  { %448 = vmatpush1.bf16.msra.mxu0 %v1556_v40  ;;  %479 = vmatprep.mubr.bf16.mxu0 %v1710_v0 }
  0xb1   :  { %449 = vmatprep.subr.bf16.mxu0 %v1561_v41 }
  0xb4   :  { %450 = vmatpush1.bf16.msra.mxu0 %v1559_v44 }
  0xb5   :  { %451 = vmatprep.subr.bf16.mxu0 %v1564_v45 }
  0xb8   :  { %452 = vmatpush1.bf16.msra.mxu0 %v1562_v46 }
  0xb9   :  { %453 = vmatprep.subr.bf16.mxu0 %v1567_v47 }
  0xbc   :  { %454 = vmatpush1.bf16.msra.mxu0 %v1565_v48 }
  0xbd   :  { %455 = vmatprep.subr.bf16.mxu0 %v1570_v49 }
  0xc0   :  { %456 = vmatpush1.bf16.msra.mxu0 %v1568_v50 }
  0xc1   :  { %457 = vmatprep.subr.bf16.mxu0 %v1573_v51 }
  0xc4   :  { %458 = vmatpush1.bf16.msra.mxu0 %v1571_v52 }
  0xc5   :  { %459 = vmatprep.subr.bf16.mxu0 %v1576_v53 }
  0xc8   :  { %460 = vmatpush1.bf16.msra.mxu0 %v1574_v54 }
  0xc9   :  { %461 = vmatprep.subr.bf16.mxu0 %v1579_v55 }
  0xcc   :  { %462 = vmatpush1.bf16.msra.mxu0 %v1577_v56  ;;  %v1580_v56 = vld [vmem:[#allocation5 + $0x40] sm:$0xff]  }
  0xcd   :  { %1432 = vmatprep.subr.bf16.mxu1 %v1580_v56  ;;  %v584_v56 = vld [vmem:[%s1962_s3] sm:$0x3f] }
  0xcf   :  { %1382 = vmatmul.mubr.msk.bf16.vlgmr.msra.gmra.mrb[4].mxu0 %vm1787_vm2, %v1711_v43 }
 0x182   :  { %v395_v57 = vpop.f32.mrb[0].mxu0  ;;  %v438_v58 = vpop.f32.mrb[0].mxu1 }
 0x183   :  { %v397_v59 = vpop.f32.mrb[1].mxu0  ;;  %v440_v60 = vpop.f32.mrb[1].mxu1  ;;  %v1804_v3 = vadd.f32 %v490_v1, %v395_v57  ;;  %v1819_v10 = vadd.f32 %v492_v5, %v438_v58  ;;  %v1581_v57 = vld [vmem:[#allocation5] sm:$0xff]  }
 0x184   :  { %v399_v61 = vpop.f32.mrb[2].mxu0  ;;  %v442_v62 = vpop.f32.mrb[2].mxu1  ;;  %v1806_v4 = vadd.f32 %v491_v2, %v397_v59  ;;  %v1834_v18 = vadd.f32 %v493_v12, %v440_v60  ;;  %v1582_v58 = vld [vmem:[#allocation5 + $0xc0] sm:$0xff]   ;;  %v1584_v60 = vld [vmem:[#allocation5 + $0x48] sm:$0xff]   ;;  %1433 = vmatpush3.bf16.msra.mxu1 %v1581_v57 }
 0x185   :  { %v401_v63 = vpop.f32.mrb[3].mxu0  ;;  %v444_v0 = vpop.f32.mrb[3].mxu1  ;;  %v524_v6 = vmul.f32 %v1804_v3, %v1804_v3  ;;  %v1815_v8 = vadd.f32 %v490_v1, %v399_v61  ;;  %v526_v17 = vmul.f32 %v1819_v10, %v1819_v10  ;;  %v1836_v19 = vadd.f32 %v492_v5, %v442_v62  ;;  %v1583_v59 = vld [vmem:[#allocation5 + $0x80] sm:$0xff]   ;;  %1454 = vmatprep.subr.bf16.mxu0 %v1582_v58  ;;  %v1586_v61 = vld [vmem:[#allocation5 + $0xc8] sm:$0xff]   ;;  %v1590_v1 = vld [vmem:[#allocation5 + $0xd0] sm:$0xff]  }
 0x186   :  { %v525_v7 = vmul.f32 %v1806_v4, %v1806_v4  ;;  %v1817_v9 = vadd.f32 %v491_v2, %v401_v63  ;;  %v508_v11 = vadd.f32 %v1806_v4, %v1804_v3  ;;  %v527_v26 = vmul.f32 %v1834_v18, %v1834_v18  ;;  %1455 = vmatpush3.bf16.msra.mxu0 %v1583_v59  ;;  %v1585_v62 = vld [vmem:[#allocation5 + $0x8] sm:$0xff]   ;;  %v1589_v2 = vld [vmem:[#allocation5 + $0x10] sm:$0xff]  }
 0x187   :  { %v530_v15 = vmul.f32 %v1815_v8, %v1815_v8  ;;  %v1848_v27 = vadd.f32 %v493_v12, %v444_v0  ;;  %v532_v29 = vmul.f32 %v1836_v19, %v1836_v19  ;;  %v1587_v63 = vld [vmem:[#allocation5 + $0x88] sm:$0xff]   ;;  %1434 = vmatprep.subr.bf16.mxu1 %v1584_v60  ;;  %1456 = vmatprep.subr.bf16.mxu0 %v1586_v61  ;;  %v1588_v0 = vld [vmem:[#allocation5 + $0x50] sm:$0xff]   ;;  %v1595_v12 = vld [vmem:[#allocation5 + $0x98] sm:$0xff]  }
 0x188   :  { %v536_v13 = vadd.f32 %v525_v7, %v524_v6  ;;  %v515_v14 = vadd.f32 %v1817_v9, %v1815_v8  ;;  %v531_v16 = vmul.f32 %v1817_v9, %v1817_v9  ;;  %v509_v20 = vadd.f32 %v508_v11, %v1819_v10  ;;  %1435 = vmatpush3.bf16.msra.mxu1 %v1585_v62  ;;  %v1591_v5 = vld [vmem:[#allocation5 + $0x90] sm:$0xff]   ;;  %v1592_v6 = vld [vmem:[#allocation5 + $0x58] sm:$0xff]  }
 0x189   :  { %v533_v43 = vmul.f32 %v1848_v27, %v1848_v27  ;;  %1436 = vmatprep.subr.bf16.mxu1 %v1588_v0  ;;  %v1594_v7 = vld [vmem:[#allocation5 + $0xd8] sm:$0xff]  }
 0x18a   :  { %v516_v21 = vadd.f32 %v515_v14, %v1836_v19  ;;  %v537_v23 = vadd.f32 %v536_v13, %v526_v17  ;;  %v543_v24 = vadd.f32 %v531_v16, %v530_v15  ;;  %v510_v32 = vadd.f32 %v509_v20, %v1834_v18  ;;  %1457 = vmatpush3.bf16.msra.mxu0 %v1587_v63  ;;  %v1593_v11 = vld [vmem:[#allocation5 + $0x18] sm:$0xff]   ;;  %v1596_v13 = vld [vmem:[#allocation5 + $0x60] sm:$0xff]   ;;  %v1600_v17 = vld [vmem:[#allocation5 + $0x68] sm:$0xff]  }
 0x18b   :  { %1458 = vmatprep.subr.bf16.mxu0 %v1590_v1  ;;  %v1598_v14 = vld [vmem:[#allocation5 + $0xe0] sm:$0xff]   ;;  %v1602_v20 = vld [vmem:[#allocation5 + $0xe8] sm:$0xff]  }
 0x18c   :  { %v517_v33 = vadd.f32 %v516_v21, %v1848_v27  ;;  %v538_v37 = vadd.f32 %v537_v23, %v527_v26  ;;  %v544_v42 = vadd.f32 %v543_v24, %v532_v29  ;;  %1437 = vmatpush3.bf16.msra.mxu1 %v1589_v2  ;;  %v1597_v15 = vld [vmem:[#allocation5 + $0x20] sm:$0xff]   ;;  %v1601_v21 = vld [vmem:[#allocation5 + $0x28] sm:$0xff]   ;;  %v1604_v23 = vld [vmem:[#allocation5 + $0x70] sm:$0xff]  }
 0x18d   :  { %1438 = vmatprep.subr.bf16.mxu1 %v1592_v6  ;;  %v1599_v16 = vld [vmem:[#allocation5 + $0xa0] sm:$0xff]   ;;  %v1606_v24 = vld [vmem:[#allocation5 + $0xf0] sm:$0xff]   ;;  %v1610_v29 = vld [vmem:[#allocation5 + $0xf8] sm:$0xff]  }
 0x18e   :  { %v545_v51 = vadd.f32 %v544_v42, %v533_v43  ;;  %1459 = vmatpush3.bf16.msra.mxu0 %v1591_v5  ;;  %v1607_v26 = vld [vmem:[#allocation5 + $0xb0] sm:$0xff]  }
 0x18f   :  { %1460 = vmatprep.subr.bf16.mxu0 %v1594_v7 }
 0x190   :  { %1439 = vmatpush3.bf16.msra.mxu1 %v1593_v11 }
 0x191   :  { %1440 = vmatprep.subr.bf16.mxu1 %v1596_v13 }
 0x192   :  { %1461 = vmatpush3.bf16.msra.mxu0 %v1595_v12 }
 0x193   :  { %1462 = vmatprep.subr.bf16.mxu0 %v1598_v14 }
 0x194   :  { %1441 = vmatpush3.bf16.msra.mxu1 %v1597_v15 }
 0x195   :  { %1442 = vmatprep.subr.bf16.mxu1 %v1600_v17 }
 0x196   :  { %1463 = vmatpush3.bf16.msra.mxu0 %v1599_v16 }
 0x197   :  { %1464 = vmatprep.subr.bf16.mxu0 %v1602_v20 }
 0x198   :  { %1443 = vmatpush3.bf16.msra.mxu1 %v1601_v21 }
 0x199   :  { %1444 = vmatprep.subr.bf16.mxu1 %v1604_v23 }
 0x1a2   :  { %v481_v28 = vpop.f32.mrb[4].mxu0 }
 0x1a3   :  { %v1852_v30 = vadd.f32 %v494_v22, %v481_v28  ;;  %v483_v31 = vpop.f32.mrb[5].mxu0  ;;  %v1608_v28 = vld [vmem:[#allocation5 + $0x78] sm:$0xff]  }
 0x1a4   :  { %v1856_v34 = vadd.f32 %v495_v25, %v483_v31  ;;  %v485_v35 = vpop.f32.mrb[6].mxu0  ;;  %v1609_v31 = vld [vmem:[#allocation5 + $0x38] sm:$0xff]  }
 0x1a5   :  { %v528_v38 = vmul.f32 %v1852_v30, %v1852_v30  ;;  %v1860_v39 = vadd.f32 %v494_v22, %v485_v35  ;;  %v487_v40 = vpop.f32.mrb[7].mxu0  ;;  %v511_v41 = vadd.f32 %v510_v32, %v1852_v30  ;;  %v1603_v22 = vld [vmem:[#allocation5 + $0xa8] sm:$0xff]   ;;  %v1611_v32 = vld [vmem:[#allocation5 + $0xb8] sm:$0xff]  }
 0x1a6   :  { %v1865_v44 = vadd.f32 %v495_v25, %v487_v40  ;;  %v529_v45 = vmul.f32 %v1856_v34, %v1856_v34  ;;  %1465 = vmatpush3.bf16.msra.mxu0 %v1603_v22  ;;  %v1605_v25 = vld [vmem:[#allocation5 + $0x30] sm:$0xff]  }
 0x1a7   :  { %v534_v46 = vmul.f32 %v1860_v39, %v1860_v39  ;;  %v512_v47 = vadd.f32 %v511_v41, %v1856_v34  ;;  %v539_v48 = vadd.f32 %v538_v37, %v528_v38  ;;  %v518_v49 = vadd.f32 %v517_v33, %v1860_v39  ;;  %1466 = vmatprep.subr.bf16.mxu0 %v1606_v24  ;;  %v1612_v33 = vld [vmem:[#allocation5 + $0x140] sm:$0xff]  }
 0x1a8   :  { %v535_v53 = vmul.f32 %v1865_v44, %v1865_v44  ;;  %1445 = vmatpush3.bf16.msra.mxu1 %v1605_v25 }
 0x1a9   :  { %513 = vadd.xlane.f32.xlu1 %v512_v47  ;;  %v540_v50 = vadd.f32 %v539_v48, %v529_v45  ;;  %v519_v52 = vadd.f32 %v518_v49, %v1865_v44  ;;  %v546_v54 = vadd.f32 %v545_v51, %v534_v46  ;;  %1446 = vmatprep.subr.bf16.mxu1 %v1608_v28  ;;  %v587_v46 = vshrl.u32 %v58_v36, 7  ;;  %v628_v36 = vld [vmem:[%s1963_s4] sm:$0x3f] }
 0x1aa   :  { %1467 = vmatpush3.bf16.msra.mxu0 %v1607_v26 }
 0x1ab   :  { %541 = vadd.xlane.f32.xlu0 %v540_v50  ;;  %v547_v55 = vadd.f32 %v546_v54, %v535_v53  ;;  %1468 = vmatprep.subr.bf16.mxu0 %v1610_v29  ;;  %v600_v53 = vsub.s32 3, %v587_v46  ;;  %v588_v54 = vsub.s32 0, %v587_v46  ;;  %v596_v57 = vsub.s32 2, %v587_v46 }
 0x1ac   :  { %1447 = vmatpush3.bf16.msra.mxu1 %v1609_v31  ;;  %v608_v58 = vsub.s32 5, %v587_v46  ;;  %v604_v59 = vsub.s32 4, %v587_v46 }
 0x1ad   :  { %520 = vadd.xlane.f32.xlu1 %v519_v52  ;;  %1476 = vmatprep.subr.bf16.mxu1 %v1612_v33  ;;  %v592_v52 = vsub.s32 1, %v587_v46  ;;  %v601_v61 = vrot.slane %v584_v56, %v600_v53  ;;  %v589_v62 = vrot.slane %v584_v56, %v588_v54  ;;  %v645_v0 = vrot.slane %v628_v36, %v600_v53 }
 0x1ae   :  { %1469 = vmatpush3.bf16.msra.mxu0 %v1611_v32  ;;  %v633_v1 = vrot.slane %v628_v36, %v588_v54  ;;  %v597_v2 = vrot.slane %v584_v56, %v596_v57  ;;  %v641_v5 = vrot.slane %v628_v36, %v596_v57  ;;  %v1887_v6 = vrot.slane %v584_v56, %v608_v58 }
 0x1af   :  { %v593_v60 = vrot.slane %v584_v56, %v592_v52  ;;  %v637_v63 = vrot.slane %v628_v36, %v592_v52  ;;  %v1889_v7 = vrot.slane %v628_v36, %v608_v58  ;;  %v1891_v11 = vrot.slane %v584_v56, %v604_v59 }
 0x1b0   :  { %v1901_v22 = vrot.slane %v628_v36, %v604_v59 }
 0x1b1   :  { %548 = vadd.xlane.f32.xlu1 %v547_v55 }
 0x236   :  { %v514_v35 = vpop.xlane.xlu1 %513 }
 0x237   :  { %v522_v37 = vmul.f32 0.0013020834, %v514_v35 }
 0x238   :  { %v542_v38 = vpop.xlane.xlu0 %541 }
 0x239   :  { %v550_v40 = vmul.f32 0.0013020834, %v542_v38  ;;  %v552_v41 = vmul.f32 %v522_v37, %v522_v37  ;;  %v556_v12 = vsub.f32 %v1804_v3, %v522_v37  ;;  %v558_v13 = vsub.f32 %v1819_v10, %v522_v37 }
 0x23a   :  { %v521_v42 = vpop.xlane.xlu1 %520  ;;  %v557_v14 = vsub.f32 %v1806_v4, %v522_v37  ;;  %v559_v15 = vsub.f32 %v1834_v18, %v522_v37  ;;  %v560_v17 = vsub.f32 %v1852_v30, %v522_v37  ;;  %v561_v21 = vsub.f32 %v1856_v34, %v522_v37 }
 0x23b   :  { %v1876_v43 = vmul.f32 0.0013020834, %v521_v42  ;;  %v554_v45 = vsub.f32 %v550_v40, %v552_v41 }
 0x23d   :  { %v568_v47 = vadd.f32 1e-05, %v554_v45  ;;  %v553_v49 = vmul.f32 %v1876_v43, %v1876_v43  ;;  %v562_v20 = vsub.f32 %v1815_v8, %v1876_v43  ;;  %v564_v10 = vsub.f32 %v1836_v19, %v1876_v43 }
 0x23e   :  { %v549_v48 = vpop.xlane.xlu1 %548  ;;  %v566_v4 = vsub.f32 %v1860_v39, %v1876_v43  ;;  %v563_v18 = vsub.f32 %v1817_v9, %v1876_v43  ;;  %v565_v29 = vsub.f32 %v1848_v27, %v1876_v43  ;;  %v567_v31 = vsub.f32 %v1865_v44, %v1876_v43 }
 0x23f   :  { %v551_v50 = vmul.f32 0.0013020834, %v549_v48  ;;  %1628 = vrsqrt.f32 %v568_v47 }
 0x241   :  { %v555_v51 = vsub.f32 %v551_v50, %v553_v49 }
 0x243   :  { %v569_v55 = vadd.f32 1e-05, %v555_v51 }
 0x245   :  { %1630 = vrsqrt.f32 %v569_v55 }
 0x249   :  { %v1629_v16 = vpop.eup %1628 }
 0x24a   :  { %v573_v23 = vmul.f32 %v1629_v16, %v557_v14  ;;  %v575_v24 = vmul.f32 %v1629_v16, %v559_v15  ;;  %v572_v25 = vmul.f32 %v1629_v16, %v556_v12  ;;  %v574_v3 = vmul.f32 %v1629_v16, %v558_v13 }
 0x24b   :  { %v577_v30 = vmul.f32 %v1629_v16, %v561_v21  ;;  %v576_v19 = vmul.f32 %v1629_v16, %v560_v17 }
 0x24c   :  { %v617_v26 = vmul.f32 %v593_v60, %v573_v23  ;;  %v619_v8 = vmul.f32 %v601_v61, %v575_v24  ;;  %v616_v28 = vmul.f32 %v589_v62, %v572_v25  ;;  %v618_v34 = vmul.f32 %v597_v2, %v574_v3 }
 0x24d   :  { %v1914_v32 = vmul.f32 %v1887_v6, %v577_v30 }
 0x24e   :  { %v661_v35 = vadd.f32 %v637_v63, %v617_v26  ;;  %v663_v37 = vadd.f32 %v645_v0, %v619_v8  ;;  %v660_v9 = vadd.f32 %v633_v1, %v616_v28  ;;  %v662_v38 = vadd.f32 %v641_v5, %v618_v34 }
 0x24f   :  { %v1916_v33 = vpop.eup %1630 }
 0x250   :  { %v579_v40 = vmul.f32 %v1916_v33, %v563_v18  ;;  %v581_v41 = vmul.f32 %v1916_v33, %v565_v29  ;;  %v578_v42 = vmul.f32 %v1916_v33, %v562_v20  ;;  %v580_v27 = vmul.f32 %v1916_v33, %v564_v10 }
 0x251   :  { %v678_v45 = vrot.slane %v661_v35, 4  ;;  %v690_v46 = vrot.slane %v663_v37, 4  ;;  %v672_v47 = vrot.slane %v660_v9, 4  ;;  %v684_v48 = vrot.slane %v662_v38, 4 }
 0x252   :  { %v623_v49 = vmul.f32 %v593_v60, %v579_v40  ;;  %v625_v50 = vmul.f32 %v601_v61, %v581_v41  ;;  %v622_v51 = vmul.f32 %v589_v62, %v578_v42  ;;  %v624_v52 = vmul.f32 %v597_v2, %v580_v27 }
 0x253   :  { %v679_v53 = vadd.f32 %v678_v45, %v661_v35  ;;  %v691_v54 = vadd.f32 %v690_v46, %v663_v37  ;;  %v673_v55 = vadd.f32 %v672_v47, %v660_v9  ;;  %v685_v56 = vadd.f32 %v684_v48, %v662_v38 }
 0x254   :  { %v667_v57 = vadd.f32 %v637_v63, %v623_v49  ;;  %v669_v36 = vadd.f32 %v645_v0, %v625_v50  ;;  %v666_v58 = vadd.f32 %v633_v1, %v622_v51  ;;  %v668_v59 = vadd.f32 %v641_v5, %v624_v52 }
 0x255   :  { %v680_v12 = vrot.slane %v679_v53, 2  ;;  %v692_v13 = vrot.slane %v691_v54, 2  ;;  %v674_v14 = vrot.slane %v673_v55, 2  ;;  %v686_v15 = vrot.slane %v685_v56, 2 }
 0x256   :  { %v714_v16 = vrot.slane %v667_v57, 4  ;;  %v726_v17 = vrot.slane %v669_v36, 4  ;;  %v708_v20 = vrot.slane %v666_v58, 4  ;;  %v720_v21 = vrot.slane %v668_v59, 4 }
 0x257   :  { %v681_v60 = vadd.f32 %v680_v12, %v679_v53  ;;  %v693_v61 = vadd.f32 %v692_v13, %v691_v54  ;;  %v675_v62 = vadd.f32 %v674_v14, %v673_v55  ;;  %v687_v2 = vadd.f32 %v686_v15, %v685_v56 }
 0x258   :  { %v715_v23 = vadd.f32 %v714_v16, %v667_v57  ;;  %v727_v24 = vadd.f32 %v726_v17, %v669_v36  ;;  %v709_v25 = vadd.f32 %v708_v20, %v666_v58  ;;  %v721_v3 = vadd.f32 %v720_v21, %v668_v59 }
 0x259   :  { %v682_v63 = vrot.slane %v681_v60, 1  ;;  %v694_v0 = vrot.slane %v693_v61, 1  ;;  %v676_v1 = vrot.slane %v675_v62, 1  ;;  %v688_v5 = vrot.slane %v687_v2, 1 }
 0x25a   :  { %v716_v10 = vrot.slane %v715_v23, 2  ;;  %v728_v18 = vrot.slane %v727_v24, 2  ;;  %v710_v30 = vrot.slane %v709_v25, 2  ;;  %v722_v26 = vrot.slane %v721_v3, 2 }
 0x25b   :  { %v683_v8 = vadd.f32 %v682_v63, %v681_v60  ;;  %v695_v28 = vadd.f32 %v694_v0, %v693_v61  ;;  %v677_v34 = vadd.f32 %v676_v1, %v675_v62  ;;  %v689_v29 = vadd.f32 %v688_v5, %v687_v2  ;;  %v1615_v5 = vld [vmem:[#allocation5 + $0x108] sm:$0xff]  }
 0x25c   :  { %v717_v35 = vadd.f32 %v716_v10, %v715_v23  ;;  %v729_v37 = vadd.f32 %v728_v18, %v727_v24  ;;  %v711_v9 = vadd.f32 %v710_v30, %v709_v25  ;;  %v723_v38 = vadd.f32 %v722_v26, %v721_v3  ;;  %v1613_v25 = vld [vmem:[#allocation5 + $0x100] sm:$0xff]  }
 0x25d   :  { %v745_v40 = vpack.c.bf16 %v683_v8, %v683_v8  ;;  %v747_v41 = vpack.c.bf16 %v695_v28, %v695_v28  ;;  %v744_v42 = vpack.c.bf16 %v677_v34, %v677_v34  ;;  %v620_v27 = vmul.f32 %v1891_v11, %v576_v19  ;;  %v1616_v8 = vld [vmem:[#allocation5 + $0x150] sm:$0xff]  }
 0x25e   :  { %v718_v45 = vrot.slane %v717_v35, 1  ;;  %v730_v46 = vrot.slane %v729_v37, 1  ;;  %v712_v47 = vrot.slane %v711_v9, 1  ;;  %v724_v48 = vrot.slane %v723_v38, 1 }
 0x25f   :  { %v872_v49 = vunpack.c.l.b16 %v745_v40  ;;  %v874_v50 = vunpack.c.l.b16 %v747_v41  ;;  %v871_v51 = vunpack.c.l.b16 %v744_v42  ;;  %v746_v52 = vpack.c.bf16 %v689_v29, %v689_v29 }
 0x260   :  { %v719_v53 = vadd.f32 %v718_v45, %v717_v35  ;;  %v731_v54 = vadd.f32 %v730_v46, %v729_v37  ;;  %v713_v55 = vadd.f32 %v712_v47, %v711_v9  ;;  %v725_v56 = vadd.f32 %v724_v48, %v723_v38  ;;  %v1617_v35 = vld [vmem:[#allocation5 + $0x110] sm:$0xff]   ;;  %v1618_v38 = vld [vmem:[#allocation5 + $0x158] sm:$0xff]   ;;  %v1620_v47 = vld [vmem:[#allocation5 + $0x160] sm:$0xff]  }
 0x261   :  { %v583_v57 = vmul.f32 %v1916_v33, %v567_v31  ;;  %v665_v19 = vadd.f32 %v1889_v7, %v1914_v32  ;;  %v582_v36 = vmul.f32 %v1916_v33, %v566_v4  ;;  %v664_v58 = vadd.f32 %v1901_v22, %v620_v27  ;;  %v1619_v27 = vld [vmem:[#allocation5 + $0x118] sm:$0xff]  }
 0x262   :  { %v751_v59 = vpack.c.bf16 %v719_v53, %v719_v53  ;;  %v753_v12 = vpack.c.bf16 %v731_v54, %v731_v54  ;;  %v750_v13 = vpack.c.bf16 %v713_v55, %v713_v55  ;;  %v752_v14 = vpack.c.bf16 %v725_v56, %v725_v56  ;;  %v1622_v54 = vld [vmem:[#allocation5 + $0x168] sm:$0xff]  }
 0x263   :  { %v873_v15 = vunpack.c.l.b16 %v746_v52  ;;  %v627_v16 = vmul.f32 %v1887_v6, %v583_v57  ;;  %v702_v44 = vrot.slane %v665_v19, 4  ;;  %v626_v31 = vmul.f32 %v1891_v11, %v582_v36  ;;  %v1623_v57 = vld [vmem:[#allocation5 + $0x128] sm:$0xff]   ;;  %v1624_v36 = vld [vmem:[#allocation5 + $0x170] sm:$0xff]  }
 0x264   :  { %v878_v17 = vunpack.c.l.b16 %v751_v59  ;;  %v880_v20 = vunpack.c.l.b16 %v753_v12  ;;  %v877_v32 = vunpack.c.l.b16 %v750_v13  ;;  %v879_v21 = vunpack.c.l.b16 %v752_v14  ;;  %v1625_v59 = vld [vmem:[#allocation5 + $0x130] sm:$0xff]   ;;  %v1626_v13 = vld [vmem:[#allocation5 + $0x178] sm:$0xff]  }
 0x265   :  { %v671_v39 = vadd.f32 %v1889_v7, %v627_v16  ;;  %v703_v43 = vadd.f32 %v702_v44, %v665_v19  ;;  %v670_v4 = vadd.f32 %v1901_v22, %v626_v31  ;;  %v696_v33 = vrot.slane %v664_v58, 4  ;;  %v1614_v7 = vld [vmem:[#allocation5 + $0x148] sm:$0xff]  }
 0x266   :  { %v885_v60 = vsel %vm883_vm3, %v878_v17, %v872_v49  ;;  %v887_v61 = vsel %vm883_vm3, %v880_v20, %v874_v50  ;;  %v884_v62 = vsel %vm883_vm3, %v877_v32, %v871_v51  ;;  %v886_v6 = vsel %vm883_vm3, %v879_v21, %v873_v15  ;;  %v1621_v51 = vld [vmem:[#allocation5 + $0x120] sm:$0xff]   ;;  %v1627_v15 = vld [vmem:[#allocation5 + $0x138] sm:$0xff]  }
 0x267   :  { %v891_v2 = vpack.c.b16 %v885_v60, %v885_v60  ;;  %v893_v11 = vpack.c.b16 %v887_v61, %v887_v61  ;;  %v890_v23 = vpack.c.b16 %v884_v62, %v884_v62  ;;  %v892_v24 = vpack.c.b16 %v886_v6, %v886_v6  ;;  %v1383_v32 = vld [vmem:[%s1965_s6] ss:$0 sm:$0xff]  ;;  %s1676_s6 = scalar_lea.vmem %s1318_s23, 32 }
 0x268   :  { %v704_v3 = vrot.slane %v703_v43, 2  ;;  %v738_v63 = vrot.slane %v671_v39, 4  ;;  %v732_v0 = vrot.slane %v670_v4, 4  ;;  %v697_v10 = vadd.f32 %v696_v33, %v664_v58  ;;  %p1677_p2 = scmp.ne.s32.totalorder %s1318_s23, %s1676_s6  ;;  %p1682_p4 = scmp.lt.s32.totalorder %s1676_s6, %s1676_s6 }
 0x269   :  { %1222 = vmatprep.mubr.bf16.mxu1 %v891_v2  ;;  %1262 = vmatprep.mubr.bf16.mxu0 %v893_v11 }
 0x26a   :  { %1223 = vmatmul.mubr.bf16.vlgmr.msra.gmra.mrb[4].mxu1 %v890_v23  ;;  %1263 = vmatmul.mubr.bf16.vlgmr.msra.gmra.mrb[8].mxu0 %v892_v24  ;;  %v705_v22 = vadd.f32 %v704_v3, %v703_v43  ;;  %v739_v1 = vadd.f32 %v738_v63, %v671_v39  ;;  %v733_v18 = vadd.f32 %v732_v0, %v670_v4  ;;  %v698_v37 = vrot.slane %v697_v10, 2  ;;  %p1683_p5 = por %p1682_p4, %p1681_p3 }
 0x26b   :  { %1477 = vmatpush3.bf16.msra.mxu1 %v1613_v25 }
 0x26c   :  { %v706_v30 = vrot.slane %v705_v22, 1  ;;  %v740_v26 = vrot.slane %v739_v1, 2  ;;  %1478 = vmatprep.subr.bf16.mxu1 %v1614_v7  ;;  %v734_v28 = vrot.slane %v733_v18, 2  ;;  %v699_v45 = vadd.f32 %v698_v37, %v697_v10  ;;  %p1684_p6 = pnand %p1683_p5, %p1677_p2 }
 0x26e   :  { %v707_v34 = vadd.f32 %v706_v30, %v705_v22  ;;  %v741_v29 = vadd.f32 %v740_v26, %v739_v1  ;;  %v735_v40 = vadd.f32 %v734_v28, %v733_v18  ;;  %v700_v52 = vrot.slane %v699_v45, 1 }
 0x26f   :  { %1479 = vmatpush3.bf16.msra.mxu1 %v1615_v5 }
 0x270   :  { %v742_v9 = vrot.slane %v741_v29, 1  ;;  %1480 = vmatprep.subr.bf16.mxu1 %v1616_v8  ;;  %v749_v42 = vpack.c.bf16 %v707_v34, %v707_v34  ;;  %v736_v48 = vrot.slane %v735_v40, 1  ;;  %v701_v19 = vadd.f32 %v700_v52, %v699_v45 }
 0x272   :  { %v743_v41 = vadd.f32 %v742_v9, %v741_v29  ;;  %v876_v49 = vunpack.c.l.b16 %v749_v42  ;;  %v737_v56 = vadd.f32 %v736_v48, %v735_v40  ;;  %v748_v12 = vpack.c.bf16 %v701_v19, %v701_v19 }
 0x273   :  { %1481 = vmatpush3.bf16.msra.mxu1 %v1617_v35 }
 0x274   :  { %v755_v46 = vpack.c.bf16 %v743_v41, %v743_v41  ;;  %1482 = vmatprep.subr.bf16.mxu1 %v1618_v38  ;;  %v754_v58 = vpack.c.bf16 %v737_v56, %v737_v56  ;;  %v875_v16 = vunpack.c.l.b16 %v748_v12 }
 0x276   :  { %v882_v50 = vunpack.c.l.b16 %v755_v46  ;;  %v881_v14 = vunpack.c.l.b16 %v754_v58 }
 0x277   :  { %1483 = vmatpush3.bf16.msra.mxu1 %v1619_v27 }
 0x278   :  { %v889_v53 = vsel %vm883_vm3, %v882_v50, %v876_v49  ;;  %1484 = vmatprep.subr.bf16.mxu1 %v1620_v47  ;;  %v888_v44 = vsel %vm883_vm3, %v881_v14, %v875_v16 }
 0x279   :  { %v895_v55 = vpack.c.b16 %v889_v53, %v889_v53  ;;  %v894_v31 = vpack.c.b16 %v888_v44, %v888_v44 }
 0x27b   :  { %1302 = vmatprep.mubr.bf16.mxu1 %v895_v55  ;;  %1485 = vmatpush3.bf16.msra.mxu1 %v1621_v51 }
 0x27c   :  { %1486 = vmatprep.subr.bf16.mxu1 %v1622_v54 }
 0x27f   :  { %1487 = vmatpush3.bf16.msra.mxu1 %v1623_v57 }
 0x280   :  { %1488 = vmatprep.subr.bf16.mxu1 %v1624_v36 }
 0x283   :  { %1489 = vmatpush3.bf16.msra.mxu1 %v1625_v59 }
 0x284   :  { %1490 = vmatprep.subr.bf16.mxu1 %v1626_v13 }
 0x287   :  { %1491 = vmatpush3.bf16.msra.mxu1 %v1627_v15 }
 0x28a   :  { %1303 = vmatmul.mubr.bf16.vlgmr.msra.gmra.mrb[8].mxu1 %v894_v31 }
 0x33d   :  { %v1448_v17 = vpop.f32.mrb[4].mxu1  ;;  %v1470_v20 = vpop.f32.mrb[8].mxu0 }
 0x33e   :  { %v1449_v21 = vpop.f32.mrb[5].mxu1  ;;  %v1471_v39 = vpop.f32.mrb[9].mxu0 }
 0x33f   :  { %v1450_v43 = vadd.f32 %v1449_v21, %v1448_v17  ;;  %v1472_v4 = vadd.f32 %v1471_v39, %v1470_v20  ;;  %v1451_v33 = vpop.f32.mrb[6].mxu1  ;;  %v1473_v60 = vpop.f32.mrb[10].mxu0 }
 0x340   :  { %v1452_v61 = vpop.f32.mrb[7].mxu1  ;;  %v1474_v62 = vpop.f32.mrb[11].mxu0 }
 0x341   :  { %v1225_v6 = vadd.f32 %v1450_v43, %v1383_v32 }
 0x343   :  { %v1265_v2 = vadd.f32 %v1472_v4, %v1225_v6 }
 0x35d   :  { %v1492_v11 = vpop.f32.mrb[8].mxu1 }
 0x35e   :  { %v1493_v23 = vpop.f32.mrb[9].mxu1 }
 0x35f   :  { %v1494_v24 = vadd.f32 %v1493_v23, %v1492_v11  ;;  %v1495_v25 = vpop.f32.mrb[10].mxu1 }
 0x360   :  { %v1496_v3 = vpop.f32.mrb[11].mxu1 }
 0x361   :  { %v1305_v63 = vadd.f32 %v1494_v24, %v1265_v2 }
 0x363   :  { %1310 = vst [vmem:[#allocation7] sm:$0x3] %v1305_v63 }
 0x364   :  { %1687 = shalt.err (!%p1684_p6)
}
 0x365   :  { %s1688_s25 = scalar_lea.hbm %s1966_s7, 32 }
 0x366   :  { %p1689_p7 = scmp.ne.s32.totalorder %s1966_s7, %s1688_s25  ;;  %p1692_p8 = scmp.lt.u32.totalorder %s1688_s25, %s1966_s7 }
 0x368   :  { %p1694_p9 = pnand %p1692_p8, %p1689_p7 }
 0x36a   :  { %1697 = shalt.err (!%p1694_p9)
}
 0x36b   :  { %1320 = dma.vmem_to_hbm [thread:$0]  %s1318_s23, 32, %s1966_s7, [#allocation4]  }
 0x36c   :  { %1702 = dma.done.wait [#allocation4], 32  }
 0x36d   :  { %1703 = vsyncadd [#allocation4], 4294967264 }
 0x36e   :  { %1324 = vsyncpa [#allocation3], 1 }
 0x36f   :  { %1325 = vsyncpa [#allocation6], 1 }
 0x370   :  { %1326 = vsyncpa [#allocation4], 1 }

</bundles_post_ra>
